<compile_context>
chip_gen: v7x
topology: tpu7x:2x2x1
jax: 0.10.0
libtpu: 0.0.40
codegen_flags: <defaults>
</compile_context>

<pallas_src>
import functools

import jax
import jax.numpy as jnp
from jax import lax
from jax.experimental import pallas as pl
from jax.experimental.pallas import tpu as pltpu


_ROWS = 8  # coordinate-table rows: [h_idx, w_idx, d_idx, 0, 0, 0, 0, 0]


def _round_up(x, m):
    return ((x + m - 1) // m) * m


def _soft_argmax_kernel(hm_ref, grid_ref, out_ref, acc_ref, *,
                        tk, rem_cols, table_resident, compute_dtype, precision):
    # hm_ref  : (tbn, tk)   native dtype -- heatmap tile (spatial flattened on lanes)
    # grid_ref: (ROWS, hwd_p) or (ROWS, tk) -- coordinate table (resident or streamed)
    # out_ref : (tbn, ROWS) f32 -- written once, at the last k step
    # acc_ref : (tbn, ROWS) f32 VMEM scratch accumulator
    k = pl.program_id(1)
    nk = pl.num_programs(1)

    @pl.when(k == 0)
    def _init():
        acc_ref[...] = jnp.zeros(acc_ref.shape, acc_ref.dtype)

    if table_resident:
        start = pl.multiple_of(k * tk, 128)
        g = grid_ref[:, pl.ds(start, tk)]                      # (ROWS, tk)
    else:
        g = grid_ref[...]                                      # (ROWS, tk)

    def _accumulate(hm):
        acc_ref[...] += lax.dot_general(
            hm.astype(compute_dtype), g,
            dimension_numbers=(((1,), (1,)), ((), ())),        # contract lane axes
            preferred_element_type=jnp.float32,
            precision=precision,
        )

    if rem_cols == 0:
        _accumulate(hm_ref[...])
    else:
        # Only the last k tile is ragged; keep the mask off the hot path.
        @pl.when(k < nk - 1)
        def _full():
            _accumulate(hm_ref[...])

        @pl.when(k == nk - 1)
        def _tail():
            hm = hm_ref[...]
            lane = lax.broadcasted_iota(jnp.int32, hm.shape, 1)
            hm = jnp.where(lane < rem_cols, hm, jnp.zeros_like(hm))
            _accumulate(hm)

    @pl.when(k == nk - 1)
    def _finalize():
        out_ref[...] = acc_ref[...]


@functools.partial(
    jax.jit,
    static_argnames=("tbn_max", "tk_bytes_max", "table_vmem_budget"))
def soft_argmax_3d(heatmap, *, tbn_max=512, tk_bytes_max=8 << 20,
                   table_vmem_budget=4 << 20):
    """Pallas equivalent of SoftArgmax3D.forward.

    Args:
        heatmap: (b, n, h, w, d) array (a valid probability distribution over
                 the spatial dims).  Streamed in its native dtype (f32 or bf16).
    Returns:
        (b, n, 3) float32 coordinates in (h, w, d) order.
    """
    b, n, h, w, d = heatmap.shape
    bn, hwd = b * n, h * w * d
    hm2d = heatmap.reshape(bn, hwd)                 # contiguous merge: free
    itemsize = jnp.dtype(hm2d.dtype).itemsize

    # --- bn tile: multiple of 8; ensure >=2 bn tiles when bn permits (v7x 2 TC) ---
    tbn = min(tbn_max, _round_up(bn, 8))
    if bn > 8:
        tbn = min(tbn, max(8, _round_up((bn + 1) // 2, 8)))
    grid_bn = pl.cdiv(bn, tbn)
    bn_p = grid_bn * tbn

    # --- hwd tile: multiple of 128, sized so one heatmap tile is ~tk_bytes_max ---
    tk_cap = max(128, (tk_bytes_max // max(1, tbn * itemsize)) // 128 * 128)
    tk = min(_round_up(hwd, 128), tk_cap)
    grid_k = pl.cdiv(hwd, tk)
    hwd_p = grid_k * tk
    rem_cols = hwd % tk                              # 0 => last tile is full

    # --- lane-dense coordinate table (ROWS, hwd_p): rows are h, w, d indices ---
    idx_h = lax.broadcasted_iota(jnp.float32, (h, w, d), 0).reshape(1, hwd)
    idx_w = lax.broadcasted_iota(jnp.float32, (h, w, d), 1).reshape(1, hwd)
    idx_d = lax.broadcasted_iota(jnp.float32, (h, w, d), 2).reshape(1, hwd)
    table = jnp.concatenate([idx_h, idx_w, idx_d], axis=0)          # (3, hwd)
    table = jnp.pad(table, ((0, _ROWS - 3), (0, hwd_p - hwd)))      # tiny pad

    # bf16 table is exact only while indices <= 255; otherwise keep f32.
    if heatmap.dtype == jnp.bfloat16 and max(h, w, d) <= 256:
        compute_dtype = jnp.bfloat16
        precision = None
    else:
        compute_dtype = jnp.float32
        precision = lax.Precision.HIGHEST
    table = table.astype(compute_dtype)
    table_itemsize = jnp.dtype(compute_dtype).itemsize

    # Keep the table fully resident in VMEM when it is small.
    table_resident = 2 * _ROWS * hwd_p * table_itemsize <= table_vmem_budget
    if table_resident:
        table_spec = pl.BlockSpec((_ROWS, hwd_p), lambda i, k: (0, 0))
    else:
        table_spec = pl.BlockSpec((_ROWS, tk), lambda i, k: (0, k))

    table_cols_in_vmem = hwd_p if table_resident else tk
    vmem_bytes = (2 * tbn * tk * itemsize                      # heatmap double buffer
                  + 2 * _ROWS * table_cols_in_vmem * table_itemsize
                  + tbn * _ROWS * 4                             # accumulator scratch
                  + 2 * tbn * _ROWS * 4)                        # output buffers
    vmem_limit = max(16 << 20, min(int(vmem_bytes * 1.5) + (4 << 20), 48 << 20))

    cost = pl.CostEstimate(
        flops=2 * bn * hwd * _ROWS,
        bytes_accessed=bn * hwd * itemsize
        + _ROWS * hwd_p * table_itemsize
        + bn_p * _ROWS * 4,
        transcendentals=0,
    )

    kernel = functools.partial(
        _soft_argmax_kernel, tk=tk, rem_cols=rem_cols,
        table_resident=table_resident, compute_dtype=compute_dtype,
        precision=precision)

    out = pl.pallas_call(
        kernel,
        out_shape=jax.ShapeDtypeStruct((bn_p, _ROWS), jnp.float32),
        grid=(grid_bn, grid_k),
        in_specs=[
            pl.BlockSpec((tbn, tk), lambda i, k: (i, k)),   # heatmap tiles
            table_spec,                                     # coordinate table
        ],
        out_specs=pl.BlockSpec((tbn, _ROWS), lambda i, k: (i, 0)),
        scratch_shapes=[pltpu.VMEM((tbn, _ROWS), jnp.float32)],
        compiler_params=pltpu.CompilerParams(
            dimension_semantics=("parallel", "arbitrary"),
            vmem_limit_bytes=vmem_limit,
        ),
        cost_estimate=cost,
    )(hm2d, table)

    return out[:bn, :3].reshape(b, n, 3)


def _reference(heatmap):
    """Pure-JAX reference mirroring the PyTorch forward."""
    b, n, h, w, d = heatmap.shape
    hm = heatmap.astype(jnp.float32)
    lin_h = jnp.arange(h, dtype=jnp.float32).reshape(1, 1, h, 1, 1)
    lin_w = jnp.arange(w, dtype=jnp.float32).reshape(1, 1, 1, w, 1)
    lin_d = jnp.arange(d, dtype=jnp.float32).reshape(1, 1, 1, 1, d)
    sh = jnp.sum(hm * lin_h, axis=(2, 3, 4))
    sw = jnp.sum(hm * lin_w, axis=(2, 3, 4))
    sd = jnp.sum(hm * lin_d, axis=(2, 3, 4))
    return jnp.stack([sh, sw, sd], axis=-1)


def _make_probs(key, shape, dtype=jnp.float32):
    b, n, _, _, _ = shape
    logits = jax.random.normal(key, shape, dtype=jnp.float32)
    probs = jax.nn.softmax(logits.reshape(b, n, -1), axis=-1).reshape(shape)
    return probs.astype(dtype)


if __name__ == "__main__":
    key = jax.random.PRNGKey(0)
    k1, k2, k3 = jax.random.split(key, 3)

    # 1) Main small test (aligned shape), f32.
    probs = _make_probs(k1, (2, 4, 8, 8, 16))
    out = jax.block_until_ready(soft_argmax_3d(probs))
    ref = _reference(probs)
    assert out.shape == (2, 4, 3), out.shape
    assert jnp.allclose(out, ref, atol=1e-4, rtol=1e-4), (out, ref)

    # 2) Force multiple k tiles (exercises init / accumulate / final-store path)
    #    and force the streamed-table path.
    out2 = jax.block_until_ready(
        soft_argmax_3d(probs, tbn_max=8, tk_bytes_max=8192, table_vmem_budget=0))
    assert jnp.allclose(out2, ref, atol=1e-4, rtol=1e-4), (out2, ref)

    # 3) Non-aligned shape: exercises the in-kernel ragged-tail mask.
    probs3 = _make_probs(k2, (1, 3, 5, 6, 7))
    out3 = jax.block_until_ready(soft_argmax_3d(probs3))
    ref3 = _reference(probs3)
    assert out3.shape == (1, 3, 3), out3.shape
    assert jnp.allclose(out3, ref3, atol=1e-4, rtol=1e-4), (out3, ref3)

    # 3b) Non-aligned shape with multiple k tiles (ragged last tile only masked).
    out3b = jax.block_until_ready(soft_argmax_3d(probs3, tbn_max=8, tk_bytes_max=4096))
    assert jnp.allclose(out3b, ref3, atol=1e-4, rtol=1e-4), (out3b, ref3)

    # 4) bf16 heatmap streamed natively (pure-bf16 MXU matmul, f32 accumulation).
    probs4 = _make_probs(k3, (2, 4, 8, 8, 16), dtype=jnp.bfloat16)
    out4 = jax.block_until_ready(soft_argmax_3d(probs4))
    ref4 = _reference(probs4)
    assert jnp.allclose(out4, ref4, atol=1e-3, rtol=1e-3), (out4, ref4)

    print("KERNEL_OK")
</pallas_src>

<mosaic_0001>
module attributes {stable_mosaic.version = 11 : i64} {
  func.func @_soft_argmax_kernel(%arg0: i32, %arg1: i32, %arg2: memref<8x1024xf32, #tpu.memory_space<vmem>>, %arg3: memref<8x1024xf32, #tpu.memory_space<vmem>>, %arg4: memref<8x8xf32, #tpu.memory_space<vmem>>, %arg5: memref<8x8xf32, #tpu.memory_space<vmem>>) attributes {dimension_semantics = [#tpu.dimension_semantics<parallel>, #tpu.dimension_semantics<arbitrary>], iteration_bounds = array<i64: 1, 1>, scalar_prefetch = 0 : i64, scratch_operands = 1 : i64, tpu.core_type = #tpu.core_type<tc>, window_params = [{transform_indices = @transform_0, window_bounds = array<i64: 8, 1024>}, {pipeline_mode = #tpu.pipeline_mode<synchronous>, transform_indices = @transform_1, window_bounds = array<i64: 8, 1024>}, {transform_indices = @transform_2, window_bounds = array<i64: 8, 8>}]} {
    %c0_i32 = arith.constant 0 : i32
    %0 = arith.cmpi eq, %arg1, %c0_i32 : i32
    %1 = arith.extui %0 : i1 to i32
    %c0_i32_0 = arith.constant 0 : i32
    %2 = arith.cmpi ne, %1, %c0_i32_0 : i32
    scf.if %2 {
      %cst_9 = arith.constant 0.000000e+00 : f32
      %15 = vector.broadcast %cst_9 : f32 to vector<8x8xf32>
      %c0_10 = arith.constant 0 : index
      %c0_11 = arith.constant 0 : index
      %16 = vector.load %arg5[%c0_10, %c0_11] : memref<8x8xf32, #tpu.memory_space<vmem>>, vector<8x8xf32>
      tpu.vector_store %arg5[%c0_10, %c0_11], %15 {strides = array<i32>} : memref<8x8xf32, #tpu.memory_space<vmem>>, vector<8x8xf32>,
    } else {
    }
    %c1024_i32 = arith.constant 1024 : i32
    %3 = arith.muli %arg1, %c1024_i32 : i32
    %4 = tpu.assume_multiple %3, 128 : i32
    %c0 = arith.constant 0 : index
    %5 = arith.index_cast %4 : i32 to index
    %6 = vector.load %arg3[%c0, %5] : memref<8x1024xf32, #tpu.memory_space<vmem>>, vector<8x1024xf32>
    %c0_1 = arith.constant 0 : index
    %c0_2 = arith.constant 0 : index
    %7 = vector.load %arg2[%c0_1, %c0_2] : memref<8x1024xf32, #tpu.memory_space<vmem>>, vector<8x1024xf32>
    %c0_3 = arith.constant 0 : index
    %c0_4 = arith.constant 0 : index
    %8 = vector.load %arg5[%c0_3, %c0_4] : memref<8x8xf32, #tpu.memory_space<vmem>>, vector<8x8xf32>
    %cst = arith.constant dense<0.000000e+00> : vector<8x8xf32>
    %9 = tpu.matmul %7, %6, %cst {dimension_numbers = #tpu.dot_dimension_numbers<[1], [1], [0], [0], [0, 0, 1, 0], [], []>, precision = #tpu.contract_precision<fp32>} : vector<8x1024xf32>, vector<8x1024xf32>, vector<8x8xf32> -> vector<8x8xf32>
    %10 = arith.addf %8, %9 : vector<8x8xf32>
    %c0_5 = arith.constant 0 : index
    %c0_6 = arith.constant 0 : index
    %11 = vector.load %arg5[%c0_5, %c0_6] : memref<8x8xf32, #tpu.memory_space<vmem>>, vector<8x8xf32>
    tpu.vector_store %arg5[%c0_5, %c0_6], %10 {strides = array<i32>} : memref<8x8xf32, #tpu.memory_space<vmem>>, vector<8x8xf32>,
    %c0_i32_7 = arith.constant 0 : i32
    %12 = arith.cmpi eq, %arg1, %c0_i32_7 : i32
    %13 = arith.extui %12 : i1 to i32
    %c0_i32_8 = arith.constant 0 : i32
    %14 = arith.cmpi ne, %13, %c0_i32_8 : i32
    scf.if %14 {
      %c0_9 = arith.constant 0 : index
      %c0_10 = arith.constant 0 : index
      %15 = vector.load %arg5[%c0_9, %c0_10] : memref<8x8xf32, #tpu.memory_space<vmem>>, vector<8x8xf32>
      %c0_11 = arith.constant 0 : index
      %c0_12 = arith.constant 0 : index
      %16 = vector.load %arg4[%c0_11, %c0_12] : memref<8x8xf32, #tpu.memory_space<vmem>>, vector<8x8xf32>
      tpu.vector_store %arg4[%c0_11, %c0_12], %15 {strides = array<i32>} : memref<8x8xf32, #tpu.memory_space<vmem>>, vector<8x8xf32>,
    } else {
    }
    return
  }
  func.func @transform_0(%arg0: i32, %arg1: i32) -> (i32, i32) {
    %c0_i32 = arith.constant 0 : i32
    return %arg0, %arg1 : i32, i32
  }
  func.func @transform_1(%arg0: i32, %arg1: i32) -> (i32, i32) {
    %c0_i32 = arith.constant 0 : i32
    %c0_i32_0 = arith.constant 0 : i32
    %c0_i32_1 = arith.constant 0 : i32
    return %c0_i32, %c0_i32_0 : i32, i32
  }
  func.func @transform_2(%arg0: i32, %arg1: i32) -> (i32, i32) {
    %c0_i32 = arith.constant 0 : i32
    %c0_i32_0 = arith.constant 0 : i32
    return %arg0, %c0_i32 : i32, i32
  }
}

</mosaic_0001>

<bundles_post_ra>
// kernel: soft_argmax_3d.1
= control target key start
LH: loop header
LB: loop body
LE: loop exit
PB: predicated region body
PF: predicated region fallthrough
CT: control target
= control target key end

     0   :  { %vm15_vm0 = vcmask 64512   ;;  %s2172_s1 = inlined_call_operand.vmem [shape: f32[8,1024], index: 1, kind: input, shape index: {}]   ;;  %s2173_s0 = inlined_call_operand.vmem [shape: f32[8,1024], index: 0, kind: input, shape index: {}]   ;;  %s2174_s2 = inlined_call_operand.vmem [shape: f32[8,8], index: 2, kind: output, shape index: {}]  }
   0x1   :  { %v23_v0 = vld [vmem:[%s2172_s1 + $0x8] sm:$0xff]  ;;  %v22_v1 = vld [vmem:[%s2172_s1] sm:$0xff]  ;;  %v25_v7 = vld [vmem:[%s2172_s1 + $0x18] sm:$0xff] }
   0x2   :  { %v31_v2 = vld [vmem:[%s2173_s0 + $0x8] sm:$0xff]  ;;  %v1967_v3 = vand.u32 4294901760, %v23_v0  ;;  %v1969_v4 = vand.u32 4294901760, %v22_v1  ;;  %v30_v6 = vld [vmem:[%s2173_s0] sm:$0xff]  ;;  %v24_v8 = vld [vmem:[%s2172_s1 + $0x10] sm:$0xff]  ;;  %v1984_v10 = vand.u32 4294901760, %v25_v7 }
   0x3   :  { %v1971_v5 = vand.u32 4294901760, %v31_v2  ;;  %v1982_v9 = vand.u32 4294901760, %v30_v6  ;;  %v33_v11 = vld [vmem:[%s2173_s0 + $0x18] sm:$0xff]  ;;  %v32_v12 = vld [vmem:[%s2173_s0 + $0x10] sm:$0xff]  ;;  %v2001_v18 = vand.u32 4294901760, %v24_v8  ;;  %v27_v38 = vld [vmem:[%s2172_s1 + $0x28] sm:$0xff] }
   0x4   :  { %40 = vmatprep.subr.mxu0 %v1967_v3  ;;  %v122_v13 = vsub.f32 %v23_v0, %v1967_v3  ;;  %v128_v15 = vsub.f32 %v22_v1, %v1969_v4  ;;  %v1997_v16 = vand.u32 4294901760, %v33_v11  ;;  %v2003_v19 = vand.u32 4294901760, %v32_v12  ;;  %v35_v39 = vld [vmem:[%s2173_s0 + $0x28] sm:$0xff]  ;;  %v26_v42 = vld [vmem:[%s2172_s1 + $0x20] sm:$0xff]  ;;  %v29_v62 = vld [vmem:[%s2172_s1 + $0x38] sm:$0xff] }
   0x5   :  { %v106_v14 = vsub.f32 %v31_v2, %v1971_v5  ;;  %196 = vmatprep.mubr.f32.mxu1 %v1971_v5  ;;  %42 = vmatpush1.xpose.msra.mxu0 %v1969_v4  ;;  %v112_v17 = vsub.f32 %v30_v6, %v1982_v9  ;;  %v2006_v24 = vsub.f32 %v25_v7, %v1984_v10  ;;  %v34_v43 = vld [vmem:[%s2173_s0 + $0x20] sm:$0xff]  ;;  %v2040_v46 = vand.u32 4294901760, %v27_v38  ;;  %v37_v63 = vld [vmem:[%s2173_s0 + $0x38] sm:$0xff]  ;;  %v28_v2 = vld [vmem:[%s2172_s1 + $0x30] sm:$0xff] }
   0x6   :  { %v123_v20 = vand.u32 4294901760, %v122_v13  ;;  %v129_v22 = vand.u32 4294901760, %v128_v15  ;;  %205 = vmatprep.subr.mxu0 %v122_v13  ;;  %v2009_v25 = vsub.f32 %v33_v11, %v1997_v16  ;;  %v2012_v30 = vsub.f32 %v24_v8, %v2001_v18 }
   0x7   :  { %v107_v21 = vand.u32 4294901760, %v106_v14  ;;  %v113_v23 = vand.u32 4294901760, %v112_v17  ;;  %v2015_v31 = vsub.f32 %v32_v12, %v2003_v19  ;;  %v595_v36 = vand.u32 4294901760, %v2006_v24 }
   0x8   :  { %v124_v26 = vsub.f32 %v122_v13, %v123_v20  ;;  %v130_v28 = vsub.f32 %v128_v15, %v129_v22  ;;  %v579_v37 = vand.u32 4294901760, %v2009_v25  ;;  %v601_v40 = vand.u32 4294901760, %v2012_v30 }
   0x9   :  { %v108_v27 = vsub.f32 %v106_v14, %v107_v21  ;;  %v114_v29 = vsub.f32 %v112_v17, %v113_v23  ;;  %v585_v41 = vand.u32 4294901760, %v2015_v31  ;;  %v596_v44 = vsub.f32 %v2006_v24, %v595_v36 }
   0xa   :  { %v125_v32 = vand.u32 4294901760, %v124_v26  ;;  %v131_v34 = vand.u32 4294901760, %v130_v28  ;;  %v580_v45 = vsub.f32 %v2009_v25, %v579_v37  ;;  %v2042_v47 = vand.u32 4294901760, %v35_v39 }
   0xb   :  { %v109_v33 = vand.u32 4294901760, %v108_v27  ;;  %v115_v35 = vand.u32 4294901760, %v114_v29  ;;  %v602_v48 = vsub.f32 %v2012_v30, %v601_v40  ;;  %v586_v49 = vsub.f32 %v2015_v31, %v585_v41 }
   0xc   :  { %126 = vmatprep.subr.mxu1 %v125_v32  ;;  %v2052_v50 = vand.u32 4294901760, %v26_v42  ;;  %v2054_v51 = vand.u32 4294901760, %v34_v43  ;;  %v597_v52 = vand.u32 4294901760, %v596_v44  ;;  %v581_v53 = vand.u32 4294901760, %v580_v45 }
   0xd   :  { %110 = vmatprep.mubr.f32.mxu0 %v109_v33  ;;  %132 = vmatpush1.xpose.msra.mxu1 %v131_v34  ;;  %v2059_v54 = vsub.f32 %v27_v38, %v2040_v46  ;;  %v2062_v55 = vsub.f32 %v35_v39, %v2042_v47  ;;  %v603_v56 = vand.u32 4294901760, %v602_v48  ;;  %v587_v57 = vand.u32 4294901760, %v586_v49 }
   0xe   :  { %116 = vmatmul.mubr.f32.vlgmr.msra.gmra.mrb[0].mxu0 %v115_v35  ;;  %282 = vmatprep.subr.mxu1 %v1967_v3  ;;  %v2068_v58 = vsub.f32 %v26_v42, %v2052_v50  ;;  %v2071_v59 = vsub.f32 %v34_v43, %v2054_v51  ;;  %v2101_v6 = vand.u32 4294901760, %v29_v62  ;;  %v2103_v7 = vand.u32 4294901760, %v37_v63 }
   0xf   :  { %208 = vmatpush1.xpose.msra.mxu0 %v128_v15  ;;  %273 = vmatprep.mubr.f32.mxu0 %v106_v14  ;;  %v1067_v60 = vand.u32 4294901760, %v2059_v54  ;;  %v1051_v61 = vand.u32 4294901760, %v2062_v55  ;;  %v2114_v11 = vand.u32 4294901760, %v28_v2  ;;  %v1942_v32 = vmov 0.0  }
  0x10   :  { %362 = vmatprep.subr.mxu0 %v123_v20  ;;  %198 = vmatmul.mubr.f32.vlgmr.msra.gmra.mrb[0].mxu1 %v1982_v9  ;;  %v1073_v0 = vand.u32 4294901760, %v2068_v58  ;;  %v1057_v1 = vand.u32 4294901760, %v2071_v59  ;;  %v1538_v15 = vsub.f32 %v29_v62, %v2101_v6  ;;  %16 = vst.msk [vmem:[#allocation2] sm:$0xff] %vm15_vm0, %v1942_v32 }
  0x11   :  { %284 = vmatpush1.xpose.msra.mxu1 %v1969_v4  ;;  %350 = vmatprep.mubr.f32.mxu1 %v107_v21 }
  0x12   :  { %276 = vmatmul.mubr.f32.vlgmr.msra.gmra.mrb[2].mxu0 %v112_v17  ;;  %438 = vmatprep.subr.mxu1 %v1967_v3  ;;  %v36_v3 = vld [vmem:[%s2173_s0 + $0x30] sm:$0xff]  ;;  %v1074_v8 = vsub.f32 %v2068_v58, %v1073_v0  ;;  %v1522_v17 = vsub.f32 %v37_v63, %v2103_v7 }
  0x13   :  { %366 = vmatpush1.xpose.msra.mxu0 %v129_v22  ;;  %430 = vmatprep.mubr.f32.mxu0 %v1971_v5  ;;  %v2116_v12 = vand.u32 4294901760, %v36_v3 }
  0x14   :  { %354 = vmatmul.mubr.f32.vlgmr.msra.gmra.mrb[2].mxu1 %v113_v23  ;;  %512 = vmatprep.subr.mxu0 %v1984_v10  ;;  %v1075_v20 = vand.u32 4294901760, %v1074_v8  ;;  %v1539_v23 = vand.u32 4294901760, %v1538_v15 }
  0x15   :  { %440 = vmatpush1.xpose.msra.mxu1 %v1969_v4  ;;  %504 = vmatprep.mubr.f32.mxu1 %v1971_v5  ;;  %v1068_v4 = vsub.f32 %v2059_v54, %v1067_v60  ;;  %v1052_v5 = vsub.f32 %v2062_v55, %v1051_v61  ;;  %v1528_v22 = vsub.f32 %v36_v3, %v2116_v12 }
  0x16   :  { %432 = vmatmul.mubr.f32.vlgmr.msra.gmra.mrb[4].mxu0 %v1982_v9  ;;  %598 = vmatprep.subr.mxu1 %v597_v52 }
  0x17   :  { %514 = vmatpush1.xpose.msra.mxu0 %v2001_v18  ;;  %582 = vmatprep.mubr.f32.mxu0 %v581_v53  ;;  %v1069_v13 = vand.u32 4294901760, %v1068_v4  ;;  %v1053_v14 = vand.u32 4294901760, %v1052_v5 }
  0x18   :  { %506 = vmatmul.mubr.f32.vlgmr.msra.gmra.mrb[4].mxu1 %v1982_v9  ;;  %677 = vmatprep.subr.mxu0 %v2006_v24  ;;  %v1058_v9 = vsub.f32 %v2071_v59, %v1057_v1  ;;  %v1523_v24 = vand.u32 4294901760, %v1522_v17 }
  0x19   :  { %604 = vmatpush1.xpose.msra.mxu1 %v603_v56  ;;  %668 = vmatprep.mubr.f32.mxu1 %v1997_v16 }
  0x1a   :  { %588 = vmatmul.mubr.f32.vlgmr.msra.gmra.mrb[6].mxu0 %v587_v57  ;;  %754 = vmatprep.subr.mxu1 %v1984_v10  ;;  %v1059_v21 = vand.u32 4294901760, %v1058_v9  ;;  %v1524_v26 = vsub.f32 %v1522_v17, %v1523_v24 }
  0x1b   :  { %680 = vmatpush1.xpose.msra.mxu0 %v2012_v30  ;;  %745 = vmatprep.mubr.f32.mxu0 %v2009_v25  ;;  %v1529_v25 = vand.u32 4294901760, %v1528_v22 }
  0x1c   :  { %670 = vmatmul.mubr.f32.vlgmr.msra.gmra.mrb[6].mxu1 %v2003_v19  ;;  %834 = vmatprep.subr.mxu0 %v595_v36  ;;  %v1525_v29 = vand.u32 4294901760, %v1524_v26 }
  0x1d   :  { %756 = vmatpush1.xpose.msra.mxu1 %v2001_v18  ;;  %822 = vmatprep.mubr.f32.mxu1 %v579_v37  ;;  %v1530_v27 = vsub.f32 %v1528_v22, %v1529_v25 }
  0x1e   :  { %748 = vmatmul.mubr.f32.vlgmr.msra.gmra.mrb[8].mxu0 %v2015_v31  ;;  %910 = vmatprep.subr.mxu1 %v1984_v10  ;;  %v1544_v10 = vsub.f32 %v28_v2, %v2114_v11 }
  0x1f   :  { %838 = vmatpush1.xpose.msra.mxu0 %v601_v40  ;;  %902 = vmatprep.mubr.f32.mxu0 %v1997_v16  ;;  %v1531_v31 = vand.u32 4294901760, %v1530_v27 }
  0x20   :  { %826 = vmatmul.mubr.f32.vlgmr.msra.gmra.mrb[8].mxu1 %v585_v41  ;;  %984 = vmatprep.subr.mxu0 %v2040_v46 }
  0x21   :  { %912 = vmatpush1.xpose.msra.mxu1 %v2001_v18  ;;  %976 = vmatprep.mubr.f32.mxu1 %v1997_v16  ;;  %v1545_v18 = vand.u32 4294901760, %v1544_v10  ;;  %v1540_v16 = vsub.f32 %v1538_v15, %v1539_v23 }
  0x22   :  { %904 = vmatmul.mubr.f32.vlgmr.msra.gmra.mrb[10].mxu0 %v2003_v19  ;;  %1070 = vmatprep.subr.mxu1 %v1069_v13 }
  0x23   :  { %986 = vmatpush1.xpose.msra.mxu0 %v2052_v50  ;;  %1054 = vmatprep.mubr.f32.mxu0 %v1053_v14  ;;  %v1541_v28 = vand.u32 4294901760, %v1540_v16 }
  0x24   :  { %978 = vmatmul.mubr.f32.vlgmr.msra.gmra.mrb[10].mxu1 %v2003_v19  ;;  %1149 = vmatprep.subr.mxu0 %v2059_v54  ;;  %v1546_v19 = vsub.f32 %v1544_v10, %v1545_v18 }
  0x25   :  { %1076 = vmatpush1.xpose.msra.mxu1 %v1075_v20  ;;  %1140 = vmatprep.mubr.f32.mxu1 %v2042_v47 }
  0x26   :  { %1060 = vmatmul.mubr.f32.vlgmr.msra.gmra.mrb[12].mxu0 %v1059_v21  ;;  %1226 = vmatprep.subr.mxu1 %v2040_v46  ;;  %v1547_v30 = vand.u32 4294901760, %v1546_v19 }
  0x27   :  { %1152 = vmatpush1.xpose.msra.mxu0 %v2068_v58  ;;  %1217 = vmatprep.mubr.f32.mxu0 %v2062_v55 }
  0x28   :  { %1142 = vmatmul.mubr.f32.vlgmr.msra.gmra.mrb[12].mxu1 %v2054_v51  ;;  %1306 = vmatprep.subr.mxu0 %v1067_v60 }
  0x29   :  { %1228 = vmatpush1.xpose.msra.mxu1 %v2052_v50  ;;  %1294 = vmatprep.mubr.f32.mxu1 %v1051_v61 }
  0x2a   :  { %1220 = vmatmul.mubr.f32.vlgmr.msra.gmra.mrb[14].mxu0 %v2071_v59  ;;  %1382 = vmatprep.subr.mxu1 %v2040_v46 }
  0x2b   :  { %1310 = vmatpush1.xpose.msra.mxu0 %v1073_v0  ;;  %1374 = vmatprep.mubr.f32.mxu0 %v2042_v47 }
  0x2c   :  { %1298 = vmatmul.mubr.f32.vlgmr.msra.gmra.mrb[14].mxu1 %v1057_v1  ;;  %1456 = vmatprep.subr.mxu0 %v2101_v6 }
  0x2d   :  { %1384 = vmatpush1.xpose.msra.mxu1 %v2052_v50  ;;  %1448 = vmatprep.mubr.f32.mxu1 %v2042_v47 }
  0x2e   :  { %1376 = vmatmul.mubr.f32.vlgmr.msra.gmra.mrb[16].mxu0 %v2054_v51  ;;  %1542 = vmatprep.subr.mxu1 %v1541_v28 }
  0x2f   :  { %1458 = vmatpush1.xpose.msra.mxu0 %v2114_v11  ;;  %1526 = vmatprep.mubr.f32.mxu0 %v1525_v29 }
  0x30   :  { %1450 = vmatmul.mubr.f32.vlgmr.msra.gmra.mrb[16].mxu1 %v2054_v51  ;;  %1621 = vmatprep.subr.mxu0 %v1538_v15 }
  0x31   :  { %1548 = vmatpush1.xpose.msra.mxu1 %v1547_v30  ;;  %1612 = vmatprep.mubr.f32.mxu1 %v2103_v7 }
  0x32   :  { %1532 = vmatmul.mubr.f32.vlgmr.msra.gmra.mrb[18].mxu0 %v1531_v31  ;;  %1698 = vmatprep.subr.mxu1 %v2101_v6 }
  0x33   :  { %1624 = vmatpush1.xpose.msra.mxu0 %v1544_v10  ;;  %1689 = vmatprep.mubr.f32.mxu0 %v1522_v17 }
  0x34   :  { %1614 = vmatmul.mubr.f32.vlgmr.msra.gmra.mrb[18].mxu1 %v2116_v12  ;;  %1778 = vmatprep.subr.mxu0 %v1539_v23 }
  0x35   :  { %1700 = vmatpush1.xpose.msra.mxu1 %v2114_v11  ;;  %1766 = vmatprep.mubr.f32.mxu1 %v1523_v24 }
  0x36   :  { %1692 = vmatmul.mubr.f32.vlgmr.msra.gmra.mrb[20].mxu0 %v1528_v22  ;;  %1854 = vmatprep.subr.mxu1 %v2101_v6 }
  0x37   :  { %1782 = vmatpush1.xpose.msra.mxu0 %v1545_v18  ;;  %1846 = vmatprep.mubr.f32.mxu0 %v2103_v7 }
  0x38   :  { %1770 = vmatmul.mubr.f32.vlgmr.msra.gmra.mrb[20].mxu1 %v1529_v25 }
  0x39   :  { %1856 = vmatpush1.xpose.msra.mxu1 %v2114_v11  ;;  %1920 = vmatprep.mubr.f32.mxu1 %v2103_v7 }
  0x3a   :  { %1848 = vmatmul.mubr.f32.vlgmr.msra.gmra.mrb[22].mxu0 %v2116_v12 }
  0x3c   :  { %1922 = vmatmul.mubr.f32.vlgmr.msra.gmra.mrb[22].mxu1 %v2116_v12 }
  0xe1   :  { %v117_v33 = vpop.f32.mrb[0].mxu0 }
  0xe2   :  { %v119_v34 = vpop.f32.mrb[1].mxu0 }
  0xe3   :  { %v199_v35 = vpop.f32.mrb[0].mxu1 }
  0xe4   :  { %v200_v36 = vadd.f32 %v199_v35, %v117_v33  ;;  %v201_v37 = vpop.f32.mrb[1].mxu1 }
  0xe5   :  { %v277_v38 = vpop.f32.mrb[2].mxu0  ;;  %v38_v37 = vld [vmem:[#allocation2] sm:$0xff] }
  0xe6   :  { %v279_v39 = vpop.f32.mrb[3].mxu0  ;;  %v278_v40 = vadd.f32 %v277_v38, %v200_v36 }
  0xe7   :  { %v355_v41 = vpop.f32.mrb[2].mxu1 }
  0xe8   :  { %v356_v42 = vadd.f32 %v355_v41, %v278_v40  ;;  %v357_v43 = vpop.f32.mrb[3].mxu1 }
  0xe9   :  { %v433_v44 = vpop.f32.mrb[4].mxu0 }
  0xea   :  { %v435_v45 = vpop.f32.mrb[5].mxu0  ;;  %v434_v46 = vadd.f32 %v433_v44, %v356_v42 }
  0xeb   :  { %v507_v47 = vpop.f32.mrb[4].mxu1 }
  0xec   :  { %v508_v48 = vadd.f32 %v507_v47, %v434_v46  ;;  %v509_v49 = vpop.f32.mrb[5].mxu1 }
  0xed   :  { %v589_v50 = vpop.f32.mrb[6].mxu0 }
  0xee   :  { %v591_v51 = vpop.f32.mrb[7].mxu0  ;;  %v590_v52 = vadd.f32 %v589_v50, %v508_v48 }
  0xef   :  { %v671_v53 = vpop.f32.mrb[6].mxu1 }
  0xf0   :  { %v672_v54 = vadd.f32 %v671_v53, %v590_v52  ;;  %v673_v55 = vpop.f32.mrb[7].mxu1 }
  0xf1   :  { %v749_v56 = vpop.f32.mrb[8].mxu0 }
  0xf2   :  { %v751_v57 = vpop.f32.mrb[9].mxu0  ;;  %v750_v58 = vadd.f32 %v749_v56, %v672_v54 }
  0xf3   :  { %v827_v59 = vpop.f32.mrb[8].mxu1 }
  0xf4   :  { %v828_v60 = vadd.f32 %v827_v59, %v750_v58  ;;  %v829_v61 = vpop.f32.mrb[9].mxu1 }
  0xf5   :  { %v905_v62 = vpop.f32.mrb[10].mxu0 }
  0xf6   :  { %v907_v63 = vpop.f32.mrb[11].mxu0  ;;  %v906_v0 = vadd.f32 %v905_v62, %v828_v60 }
  0xf7   :  { %v979_v1 = vpop.f32.mrb[10].mxu1 }
  0xf8   :  { %v980_v2 = vadd.f32 %v979_v1, %v906_v0  ;;  %v981_v3 = vpop.f32.mrb[11].mxu1 }
  0xf9   :  { %v1061_v4 = vpop.f32.mrb[12].mxu0 }
  0xfa   :  { %v1063_v5 = vpop.f32.mrb[13].mxu0  ;;  %v1062_v6 = vadd.f32 %v1061_v4, %v980_v2 }
  0xfb   :  { %v1143_v7 = vpop.f32.mrb[12].mxu1 }
  0xfc   :  { %v1144_v8 = vadd.f32 %v1143_v7, %v1062_v6  ;;  %v1145_v9 = vpop.f32.mrb[13].mxu1 }
  0xfd   :  { %v1221_v11 = vpop.f32.mrb[14].mxu0 }
  0xfe   :  { %v1223_v12 = vpop.f32.mrb[15].mxu0  ;;  %v1222_v13 = vadd.f32 %v1221_v11, %v1144_v8 }
  0xff   :  { %v1299_v14 = vpop.f32.mrb[14].mxu1 }
 0x100   :  { %v1300_v15 = vadd.f32 %v1299_v14, %v1222_v13  ;;  %v1301_v17 = vpop.f32.mrb[15].mxu1 }
 0x101   :  { %v1377_v20 = vpop.f32.mrb[16].mxu0 }
 0x102   :  { %v1379_v21 = vpop.f32.mrb[17].mxu0  ;;  %v1378_v10 = vadd.f32 %v1377_v20, %v1300_v15 }
 0x103   :  { %v1451_v22 = vpop.f32.mrb[16].mxu1 }
 0x104   :  { %v1452_v23 = vadd.f32 %v1451_v22, %v1378_v10  ;;  %v1453_v24 = vpop.f32.mrb[17].mxu1 }
 0x105   :  { %v1533_v18 = vpop.f32.mrb[18].mxu0 }
 0x106   :  { %v1535_v25 = vpop.f32.mrb[19].mxu0  ;;  %v1534_v16 = vadd.f32 %v1533_v18, %v1452_v23 }
 0x107   :  { %v1615_v26 = vpop.f32.mrb[18].mxu1 }
 0x108   :  { %v1616_v19 = vadd.f32 %v1615_v26, %v1534_v16  ;;  %v1617_v27 = vpop.f32.mrb[19].mxu1 }
 0x109   :  { %v1693_v28 = vpop.f32.mrb[20].mxu0 }
 0x10a   :  { %v1695_v29 = vpop.f32.mrb[21].mxu0  ;;  %v1694_v30 = vadd.f32 %v1693_v28, %v1616_v19 }
 0x10b   :  { %v1771_v31 = vpop.f32.mrb[20].mxu1 }
 0x10c   :  { %v1772_v32 = vadd.f32 %v1771_v31, %v1694_v30  ;;  %v1773_v33 = vpop.f32.mrb[21].mxu1 }
 0x10d   :  { %v1849_v34 = vpop.f32.mrb[22].mxu0 }
 0x10e   :  { %v1851_v35 = vpop.f32.mrb[23].mxu0  ;;  %v1850_v36 = vadd.f32 %v1849_v34, %v1772_v32 }
 0x10f   :  { %v1923_v38 = vpop.f32.mrb[22].mxu1 }
 0x110   :  { %v1924_v39 = vadd.f32 %v1923_v38, %v1850_v36  ;;  %v1925_v40 = vpop.f32.mrb[23].mxu1 }
 0x112   :  { %v1927_v41 = vadd.f32 %v1924_v39, %v38_v37 }
 0x114   :  { %1929 = vst.msk [vmem:[#allocation2] sm:$0xff] %vm15_vm0, %v1927_v41 }
 0x11b   :  { %v1933_v42 = vld [vmem:[#allocation2] sm:$0xff] }
 0x11c   :  { %1934 = vst.msk [vmem:[%s2174_s2] sm:$0xff] %vm15_vm0, %v1933_v42 }

</bundles_post_ra>
